<compile_context>
chip_gen: v5e
topology: v5e:2x2
jax: 0.10.0
libtpu: 0.0.40
codegen_flags: <defaults>
</compile_context>

<pallas_src>
import jax
import jax.numpy as jnp
from jax.experimental import pallas as pl
from jax.experimental.pallas import tpu as pltpu


def _round_up(x, m):
    return ((x + m - 1) // m) * m


def _full_embedding_kernel(x_ref, m_ref, wd_ref, wm_ref, b_ref, o_ref):
    # data embedding:     [TM, P*Fd] @ [P*Fd, P*D] -> [TM, P*D]   (MXU, f32 acc)
    acc = jnp.dot(x_ref[...], wd_ref[...], preferred_element_type=jnp.float32)
    # metadata embedding: [TM, P*Fm] @ [P*Fm, P*D] -> [TM, P*D]   (MXU, f32 acc)
    acc = acc + jnp.dot(m_ref[...], wm_ref[...], preferred_element_type=jnp.float32)
    # combine (sum) + bias in f32 (VPU), single cast on the lane-dense store.
    o_ref[...] = (acc + b_ref[...].astype(jnp.float32)).astype(o_ref.dtype)


def full_embedding(x, metadata, w_data, w_meta, bias, *, tile_rows=1024):
    """x: [B, S, Fd], metadata: [B, S, Fm] -> [B, S, Dout]."""
    B, S, Fd = x.shape
    _, _, Fm = metadata.shape
    Dout = w_data.shape[1]
    T = B * S

    # Pack P tokens per output row so the output last dim is 128 lanes.
    P = 128 // Dout if (Dout <= 128 and 128 % Dout == 0) else 1

    r0 = pl.cdiv(T, P)                                    # packed rows needed
    tile = _round_up(min(tile_rows, _round_up(r0, 8)), 8)  # rows per grid step
    R = _round_up(r0, tile)                               # grid divides evenly
    T_pad = R * P

    x2 = x.reshape(T, Fd)
    m2 = metadata.reshape(T, Fm)
    if T_pad != T:
        x2 = jnp.pad(x2, ((0, T_pad - T), (0, 0)))
        m2 = jnp.pad(m2, ((0, T_pad - T), (0, 0)))

    # Free, contiguous reshapes: row r holds tokens r*P .. r*P+P-1.
    x_pack = x2.reshape(R, P * Fd)
    m_pack = m2.reshape(R, P * Fm)

    # Block-diagonal weights / tiled bias reproduce the per-token projection
    # in the packed layout.  Tiny ([P*F, 128]) and VMEM-resident.
    wd_big = jnp.kron(jnp.eye(P, dtype=w_data.dtype), w_data)   # [P*Fd, P*Dout]
    wm_big = jnp.kron(jnp.eye(P, dtype=w_meta.dtype), w_meta)   # [P*Fm, P*Dout]
    b_big = jnp.tile(bias, P).reshape(1, P * Dout)              # [1, P*Dout]

    grid = (R // tile,)
    itemsize = jnp.dtype(x.dtype).itemsize
    cost = pl.CostEstimate(
        flops=2 * T_pad * (Fd + Fm) * Dout,
        transcendentals=0,
        bytes_accessed=(x_pack.size + m_pack.size + R * P * Dout) * itemsize
        + (wd_big.size + wm_big.size + b_big.size) * jnp.dtype(w_data.dtype).itemsize,
    )

    out_pack = pl.pallas_call(
        _full_embedding_kernel,
        out_shape=jax.ShapeDtypeStruct((R, P * Dout), x.dtype),
        grid_spec=pl.GridSpec(
            grid=grid,
            in_specs=[
                pl.BlockSpec((tile, P * Fd), lambda i: (i, 0)),        # stream
                pl.BlockSpec((tile, P * Fm), lambda i: (i, 0)),        # stream
                pl.BlockSpec((P * Fd, P * Dout), lambda i: (0, 0)),    # resident
                pl.BlockSpec((P * Fm, P * Dout), lambda i: (0, 0)),    # resident
                pl.BlockSpec((1, P * Dout), lambda i: (0, 0)),         # resident
            ],
            out_specs=pl.BlockSpec((tile, P * Dout), lambda i: (i, 0)),
        ),
        compiler_params=pltpu.CompilerParams(
            # every row-tile is independent -> legal to shard across v7x's 2 TCs
            dimension_semantics=("parallel",),
        ),
        cost_estimate=cost,
    )(x_pack, m_pack, wd_big, wm_big, b_big)

    out = out_pack.reshape(T_pad, Dout)[:T]
    return out.reshape(B, S, Dout)


if __name__ == "__main__":
    # Small shapes consistent with the module:
    #   data_embedding.input_features      = 4
    #   metadata_embedding.input_features  = 6
    #   output_features                    = 32
    B, S = 2, 8
    F_DATA, F_META, D_OUT = 4, 6, 32

    key = jax.random.PRNGKey(0)
    k_x, k_m, k_wd, k_wm, k_b = jax.random.split(key, 5)

    x = jax.random.normal(k_x, (B, S, F_DATA), dtype=jnp.float32)
    metadata = jax.random.normal(k_m, (B, S, F_META), dtype=jnp.float32)

    # Deterministic "parameters" (synthetic, not loaded from a checkpoint).
    w_data = jax.random.normal(k_wd, (F_DATA, D_OUT), dtype=jnp.float32) * 0.1
    w_meta = jax.random.normal(k_wm, (F_META, D_OUT), dtype=jnp.float32) * 0.1
    bias = jax.random.normal(k_b, (D_OUT,), dtype=jnp.float32) * 0.01

    out = full_embedding(x, metadata, w_data, w_meta, bias)
    out = jax.block_until_ready(out)

    # Pure-JAX reference for correctness.
    ref = (
        jnp.einsum("bsf,fd->bsd", x, w_data)
        + jnp.einsum("bsf,fd->bsd", metadata, w_meta)
        + bias
    )
    assert out.shape == (B, S, D_OUT), out.shape
    assert jnp.allclose(out, ref, atol=1e-5, rtol=1e-5), "mismatch vs reference"

    print("KERNEL_OK")
</pallas_src>

<mosaic_0001>
module attributes {stable_mosaic.version = 11 : i64} {
  func.func @_full_embedding_kernel(%arg0: i32, %arg1: memref<8x16xf32, #tpu.memory_space<vmem>>, %arg2: memref<8x24xf32, #tpu.memory_space<vmem>>, %arg3: memref<16x128xf32, #tpu.memory_space<vmem>>, %arg4: memref<24x128xf32, #tpu.memory_space<vmem>>, %arg5: memref<1x128xf32, #tpu.memory_space<vmem>>, %arg6: memref<8x128xf32, #tpu.memory_space<vmem>>) attributes {dimension_semantics = [#tpu.dimension_semantics<parallel>], iteration_bounds = array<i64: 1>, scalar_prefetch = 0 : i64, scratch_operands = 0 : i64, tpu.core_type = #tpu.core_type<tc>, window_params = [{transform_indices = @transform_0, window_bounds = array<i64: 8, 16>}, {transform_indices = @transform_1, window_bounds = array<i64: 8, 24>}, {pipeline_mode = #tpu.pipeline_mode<synchronous>, transform_indices = @transform_2, window_bounds = array<i64: 16, 128>}, {pipeline_mode = #tpu.pipeline_mode<synchronous>, transform_indices = @transform_3, window_bounds = array<i64: 24, 128>}, {pipeline_mode = #tpu.pipeline_mode<synchronous>, transform_indices = @transform_4, window_bounds = array<i64: 1, 128>}, {transform_indices = @transform_5, window_bounds = array<i64: 8, 128>}]} {
    %c0 = arith.constant 0 : index
    %c0_0 = arith.constant 0 : index
    %0 = vector.load %arg1[%c0, %c0_0] : memref<8x16xf32, #tpu.memory_space<vmem>>, vector<8x16xf32>
    %c0_1 = arith.constant 0 : index
    %c0_2 = arith.constant 0 : index
    %1 = vector.load %arg3[%c0_1, %c0_2] : memref<16x128xf32, #tpu.memory_space<vmem>>, vector<16x128xf32>
    %cst = arith.constant dense<0.000000e+00> : vector<8x128xf32>
    %2 = tpu.matmul %0, %1, %cst {dimension_numbers = #tpu.dot_dimension_numbers<[1], [0], [0], [1], [0, 0, 1, 1], [], []>} : vector<8x16xf32>, vector<16x128xf32>, vector<8x128xf32> -> vector<8x128xf32>
    %c0_3 = arith.constant 0 : index
    %c0_4 = arith.constant 0 : index
    %3 = vector.load %arg2[%c0_3, %c0_4] : memref<8x24xf32, #tpu.memory_space<vmem>>, vector<8x24xf32>
    %c0_5 = arith.constant 0 : index
    %c0_6 = arith.constant 0 : index
    %4 = vector.load %arg4[%c0_5, %c0_6] : memref<24x128xf32, #tpu.memory_space<vmem>>, vector<24x128xf32>
    %cst_7 = arith.constant dense<0.000000e+00> : vector<8x128xf32>
    %5 = tpu.matmul %3, %4, %cst_7 {dimension_numbers = #tpu.dot_dimension_numbers<[1], [0], [0], [1], [0, 0, 1, 1], [], []>} : vector<8x24xf32>, vector<24x128xf32>, vector<8x128xf32> -> vector<8x128xf32>
    %6 = arith.addf %2, %5 : vector<8x128xf32>
    %c0_8 = arith.constant 0 : index
    %c0_9 = arith.constant 0 : index
    %7 = vector.load %arg5[%c0_8, %c0_9] : memref<1x128xf32, #tpu.memory_space<vmem>>, vector<1x128xf32>
    %8 = vector.broadcast %7 : vector<1x128xf32> to vector<8x128xf32>
    %9 = arith.addf %6, %8 : vector<8x128xf32>
    %c0_10 = arith.constant 0 : index
    %c0_11 = arith.constant 0 : index
    %10 = vector.load %arg6[%c0_10, %c0_11] : memref<8x128xf32, #tpu.memory_space<vmem>>, vector<8x128xf32>
    tpu.vector_store %arg6[%c0_10, %c0_11], %9 {strides = array<i32>} : memref<8x128xf32, #tpu.memory_space<vmem>>, vector<8x128xf32>,
    return
  }
  func.func @transform_0(%arg0: i32) -> (i32, i32) {
    %c0_i32 = arith.constant 0 : i32
    %c0_i32_0 = arith.constant 0 : i32
    return %arg0, %c0_i32 : i32, i32
  }
  func.func @transform_1(%arg0: i32) -> (i32, i32) {
    %c0_i32 = arith.constant 0 : i32
    %c0_i32_0 = arith.constant 0 : i32
    return %arg0, %c0_i32 : i32, i32
  }
  func.func @transform_2(%arg0: i32) -> (i32, i32) {
    %c0_i32 = arith.constant 0 : i32
    %c0_i32_0 = arith.constant 0 : i32
    %c0_i32_1 = arith.constant 0 : i32
    return %c0_i32, %c0_i32_0 : i32, i32
  }
  func.func @transform_3(%arg0: i32) -> (i32, i32) {
    %c0_i32 = arith.constant 0 : i32
    %c0_i32_0 = arith.constant 0 : i32
    %c0_i32_1 = arith.constant 0 : i32
    return %c0_i32, %c0_i32_0 : i32, i32
  }
  func.func @transform_4(%arg0: i32) -> (i32, i32) {
    %c0_i32 = arith.constant 0 : i32
    %c0_i32_0 = arith.constant 0 : i32
    %c0_i32_1 = arith.constant 0 : i32
    return %c0_i32, %c0_i32_0 : i32, i32
  }
  func.func @transform_5(%arg0: i32) -> (i32, i32) {
    %c0_i32 = arith.constant 0 : i32
    %c0_i32_0 = arith.constant 0 : i32
    return %arg0, %c0_i32 : i32, i32
  }
}

</mosaic_0001>

<bundles_post_ra>
// kernel: tpu_custom_call.1
= control target key start
LH: loop header
LB: loop body
LE: loop exit
PB: predicated region body
PF: predicated region fallthrough
CT: control target
= control target key end

     0   :  { %10 = vsyncpa [#allocation3], 0  ;;  %s353_s0 = inlined_call_operand.hbm [shape: f32[8,16], index: 0, kind: input, shape index: {}]   ;;  %s354_s1 = inlined_call_operand.hbm [shape: f32[8,24], index: 1, kind: input, shape index: {}]   ;;  %s355_s2 = inlined_call_operand.hbm [shape: f32[16,128], index: 2, kind: input, shape index: {}]   ;;  %s356_s3 = inlined_call_operand.hbm [shape: f32[24,128], index: 3, kind: input, shape index: {}]   ;;  %s357_s4 = inlined_call_operand.vmem [shape: f32[1,128], index: 4, kind: input, shape index: {}]   ;;  %s358_s5 = inlined_call_operand.hbm [shape: f32[8,128], index: 5, kind: output, shape index: {}]  }
   0x1   :  { %11 = vsyncpa [#allocation6], 0 }
   0x2   :  { %12 = vsyncpa [#allocation9], 0  ;;  %s30_s20 = sshll.u32 %s354_s1, 4  ;;  %s31_s20 = int_to_ptr.hbm [resolvable:$true] %s30_s20 }
   0x3   :  { %13 = vsyncpa [#allocation4], 0  ;;  %s298_s21 = smov [#allocation5]   ;;  %s19_s25 = sshll.u32 %s353_s0, 4  ;;  %s20_s25 = int_to_ptr.hbm [resolvable:$true] %s19_s25 }
   0x4   :  { %s32_s22 = sshll.u32 %s298_s21, 4  ;;  %s299_s26 = smov [#allocation2]   ;;  %s33_s22 = int_to_ptr.vmem [resolvable:$true] %s32_s22 }
   0x5   :  { %35 = dma.hbm_to_vmem [thread:$0]  %s31_s20, 128, %s33_s22, [#allocation6]  }
   0x6   :  { %s21_s27 = sshll.u32 %s299_s26, 4  ;;  %s40_s30 = sshll.u32 %s355_s2, 4  ;;  %s22_s27 = int_to_ptr.vmem [resolvable:$true] %s21_s27  ;;  %s41_s30 = int_to_ptr.hbm [resolvable:$true] %s40_s30 }
   0x7   :  { %24 = dma.hbm_to_vmem [thread:$0]  %s20_s25, 128, %s22_s27, [#allocation3]  }
   0x8   :  { %s300_s1 = smov [#allocation7]   ;;  %s53_s9 = sshll.u32 %s356_s3, 4  ;;  %s54_s9 = int_to_ptr.hbm [resolvable:$true] %s53_s9 }
   0x9   :  { %s42_s6 = sshll.u32 %s300_s1, 4  ;;  %s301_s10 = smov 128   ;;  %s43_s6 = int_to_ptr.vmem [resolvable:$true] %s42_s6 }
   0xa   :  { %s302_s0 = smov 8   ;;  %s303_s11 = smov [#allocation8]  }
   0xb   :  { %48 = dma.hbm_to_vmem [thread:$0]  %s41_s30, 256, %s43_s6, [#allocation6], %s301_s10, %s301_s10, %s302_s0  }
   0xc   :  { %s55_s12 = sshll.u32 %s303_s11, 4  ;;  %s56_s12 = int_to_ptr.vmem [resolvable:$true] %s55_s12 }
   0xd   :  { %61 = dma.hbm_to_vmem [thread:$0]  %s54_s9, 384, %s56_s12, [#allocation9], %s301_s10, %s301_s10, %s302_s0  }
   0xe   :  { %290 = dma.done.wait [#allocation3], 128  }
   0xf   :  { %291 = vsyncadd [#allocation3], 4294967168 }
  0x10   :  { %292 = dma.done.wait [#allocation6], 384  }
  0x11   :  { %293 = vsyncadd [#allocation6], 4294966912 }
  0x12   :  { %294 = dma.done.wait [#allocation9], 384  }
  0x13   :  { %295 = vsyncadd [#allocation9], 4294966912  ;;  %v86_v0 = vld [vmem:[#allocation8 + $0x10] sm:$0xff]  ;;  %v85_v1 = vld [vmem:[#allocation8 + $0x8] sm:$0xff]  ;;  %vm111_vm0 = vcmask 130048   ;;  %vm87_vm1 = vcmask 195584  }
  0x14   :  { %v82_v2 = vld [vmem:[#allocation7 + $0x8] sm:$0xff]  ;;  %104 = vmatpush.msra.mxu0 %v86_v0  ;;  %v81_v3 = vld [vmem:[#allocation7] sm:$0xff]  ;;  %v84_v4 = vld [vmem:[#allocation8] sm:$0xff]  ;;  %s304_s13 = smov [#allocation10]   ;;  %s148_s17 = sshll.u32 %s358_s5, 4  ;;  %s149_s17 = int_to_ptr.hbm [resolvable:$true] %s148_s17 }
  0x15   :  { %129 = vmatpush.msra.mxu1 %v82_v2  ;;  %v80_v5 = vld [vmem:[#allocation2] sm:$0xff]  ;;  %v83_v6 = vld [vmem:[#allocation5] sm:$0xff]  ;;  %s146_s14 = sshll.u32 %s304_s13, 4  ;;  %s147_s14 = int_to_ptr.vmem [resolvable:$true] %s146_s14 }
  0x16   :  { %105 = vmatpush.msra.mxu0 %v85_v1  ;;  %v169_v8 = vld [vmem:[%s357_s4] ss:$0 sm:$0xff] }
  0x17   :  { %130 = vmatpush.msra.mxu1 %v81_v3 }
  0x18   :  { %161 = vmatmul.msk.f32.vlgmr.msra.gmra.mxu1 %vm111_vm0, %v80_v5  ;;  %106 = vmatpush.msra.mxu0 %v84_v4 }
  0x19   :  { %160 = vmatmul.msk.f32.vlgmr.msra.gmra.mxu0 %vm87_vm1, %v83_v6 }
  0x95   :  { %v132_v7 = vpop.f32.mrf.mxu1 }
  0x96   :  { %v108_v9 = vpop.f32.mrf.mxu0 }
  0x97   :  { %v133_v10 = vadd.f32 %v132_v7, %v108_v9 }
  0x99   :  { %v139_v11 = vadd.f32 %v169_v8, %v133_v10 }
  0x9b   :  { %140 = vst [vmem:[#allocation10] sm:$0xff] %v139_v11 }
  0x9c   :  { %151 = dma.vmem_to_hbm [thread:$0]  %s147_s14, 128, %s149_s17, [#allocation4]  }
  0x9d   :  { %296 = dma.done.wait [#allocation4], 128  }
  0x9e   :  { %297 = vsyncadd [#allocation4], 4294967168 }
  0x9f   :  { %156 = vsyncpa [#allocation3], 1 }
  0xa0   :  { %157 = vsyncpa [#allocation6], 1 }
  0xa1   :  { %158 = vsyncpa [#allocation9], 1 }
  0xa2   :  { %159 = vsyncpa [#allocation4], 1 }

</bundles_post_ra>
